<compile_context>
chip_gen: v6e
topology: v6e:2x2x1
jax: 0.10.0
libtpu: 0.0.40
codegen_flags: <defaults>
</compile_context>

<pallas_src>
import jax
import jax.numpy as jnp
from jax.experimental import pallas as pl
from jax.experimental.pallas import tpu as pltpu

EF_FEAT = 128                 # fen.ef.classifier = nn.Linear(1280, 128)
N_PAIRS = 12                  # 6 horizontal + 6 vertical fragment pairs
FEAT_DIM = EF_FEAT * N_PAIRS  # 1536
BN_EPS = 1e-5                 # nn.BatchNorm1d default eps


# ----------------------------------------------------------------------------
# Pallas kernel: whole critic head for one effective row -> (1, 1) scalar.
#   vec_ref: (5, max(H1, H2)) f32
#     row 0: fen.fc1 bias with eval-BatchNorm folded in      (H1 valid lanes)
#     row 1: fen.fc2 bias                                     (H1 valid lanes)
#     row 2: critic.fc1 bias                                  (H2 valid lanes)
#     row 3: critic.fc weight row                             (H2 valid lanes)
#     row 4: critic.fc bias at lane 0
#   w_ref:  (H1, H1 + H2) bf16  =  [ fen.fc2^T | critic.fc1^T ]
# ----------------------------------------------------------------------------
def critic_head_kernel(vec_ref, w_ref, out_ref):
    h1 = w_ref.shape[0]
    h2 = w_ref.shape[1] - h1
    wdt = w_ref.dtype

    # fen: feature_tensor == 0 exactly -> fc1(feat) == bias (BN pre-folded);
    # Dropout1d is identity in eval mode.
    h = jnp.maximum(vec_ref[0:1, :h1], 0.0)                        # (1, H1)

    # fen.fc2: bf16 weights, f32 MXU accumulation.
    x = jnp.dot(h.astype(wdt), w_ref[:, :h1],
                preferred_element_type=jnp.float32) + vec_ref[1:2, :h1]

    # critic.fc1 + ReLU (Dropout = identity in eval).
    x = jnp.dot(x.astype(wdt), w_ref[:, h1:],
                preferred_element_type=jnp.float32) + vec_ref[2:3, :h2]
    x = jnp.maximum(x, 0.0)                                        # (1, H2)

    # critic.fc -> scalar.
    y = jnp.sum(x * vec_ref[3:4, :h2], axis=-1, keepdims=True)     # (1, 1)
    out_ref[...] = y + vec_ref[4:5, 0:1]


# ----------------------------------------------------------------------------
# Host-side parameter folding (done once, in f32).
# ----------------------------------------------------------------------------
def fold_params(raw, weight_dtype=jnp.bfloat16):
    scale = raw["bn_gamma"] / jnp.sqrt(raw["bn_rv"] + BN_EPS)
    b1_folded = (raw["fen_fc1_b"] - raw["bn_rm"]) * scale + raw["bn_beta"]

    h1 = b1_folded.shape[0]
    h2 = raw["c_fc1_b"].shape[0]
    width = max(h1, h2)

    vec = jnp.zeros((5, width), jnp.float32)
    vec = vec.at[0, :h1].set(b1_folded)            # fen.fc1 bias (+BN folded)
    vec = vec.at[1, :h1].set(raw["fen_fc2_b"])     # fen.fc2 bias
    vec = vec.at[2, :h2].set(raw["c_fc1_b"])       # critic.fc1 bias
    vec = vec.at[3, :h2].set(raw["c_fc_w"][0])     # critic.fc weight row
    vec = vec.at[4, 0].set(raw["c_fc_b"][0])       # critic.fc bias

    # One packed weight slab: [ fen.fc2^T (H1,H1) | critic.fc1^T (H1,H2) ]
    w = jnp.concatenate([raw["fen_fc2_w"].T, raw["c_fc1_w"].T], axis=1)

    return {"vec": vec, "w": w.astype(weight_dtype)}


# ----------------------------------------------------------------------------
# Wrapper around pallas_call.
# ----------------------------------------------------------------------------
def critic_model_forward(image, kparams):
    """Pallas implementation of critic_model.forward (eval mode)."""
    B = image.shape[0]   # image content is unused: ef(f) - ef(f) == 0 exactly.
    h1 = kparams["w"].shape[0]
    h2 = kparams["w"].shape[1] - h1

    flops = 2 * (h1 * h1 + h1 * h2 + h2)
    bytes_accessed = (int(kparams["vec"].size) * kparams["vec"].dtype.itemsize
                      + int(kparams["w"].size) * kparams["w"].dtype.itemsize
                      + 4)

    vmem_full = pl.BlockSpec(memory_space=pltpu.MemorySpace.VMEM)

    y = pl.pallas_call(
        critic_head_kernel,
        out_shape=jax.ShapeDtypeStruct((1, 1), jnp.float32),
        in_specs=[vmem_full, vmem_full],     # full arrays, no grid/pipelining
        out_specs=vmem_full,
        cost_estimate=pl.CostEstimate(flops=flops, transcendentals=0,
                                      bytes_accessed=bytes_accessed),
    )(kparams["vec"], kparams["w"])

    # Broadcast to (B, 1) outside the kernel: lane-dense kernel output, and a
    # single compile serves every batch size.
    return jnp.broadcast_to(y, (B, 1))


# ----------------------------------------------------------------------------
# Synthetic parameters (PyTorch layout) and references for validation.
# ----------------------------------------------------------------------------
def init_raw_params(key, h1, h2):
    ks = jax.random.split(key, 12)
    u = lambda k, shape, b: jax.random.uniform(k, shape, jnp.float32, -b, b)
    b_fc1 = 1.0 / jnp.sqrt(FEAT_DIM)
    b_h1 = 1.0 / jnp.sqrt(h1)
    b_h2 = 1.0 / jnp.sqrt(h2)
    return {
        # fen.fc1: Linear(1536, h1) — never needed by the kernel (feat == 0).
        "fen_fc1_w": u(ks[0], (h1, FEAT_DIM), b_fc1),
        "fen_fc1_b": u(ks[1], (h1,), b_fc1),
        # fen.bn (eval-mode running statistics)
        "bn_gamma": 1.0 + 0.1 * jax.random.uniform(ks[2], (h1,), jnp.float32),
        "bn_beta": 0.1 * jax.random.normal(ks[3], (h1,), jnp.float32),
        "bn_rm": 0.1 * jax.random.normal(ks[4], (h1,), jnp.float32),
        "bn_rv": 1.0 + 0.1 * jax.random.uniform(ks[5], (h1,), jnp.float32),
        # fen.fc2: Linear(h1, h1)  (critic passes hidden_size2 = hidden_size1)
        "fen_fc2_w": u(ks[6], (h1, h1), b_h1),
        "fen_fc2_b": u(ks[7], (h1,), b_h1),
        # critic.fc1: Linear(h1, h2)
        "c_fc1_w": u(ks[8], (h2, h1), b_h1),
        "c_fc1_b": u(ks[9], (h2,), b_h1),
        # critic.fc: Linear(h2, 1)
        "c_fc_w": u(ks[10], (1, h2), b_h2),
        "c_fc_b": u(ks[11], (1,), b_h2),
    }


def reference_forward(image, raw):
    """Original-module semantics in pure f32 JAX (eval mode)."""
    B = image.shape[0]
    feat = jnp.zeros((B, FEAT_DIM), jnp.float32)      # ef(f) - ef(f) == 0
    x = feat @ raw["fen_fc1_w"].T + raw["fen_fc1_b"]
    x = ((x - raw["bn_rm"]) / jnp.sqrt(raw["bn_rv"] + BN_EPS)
         * raw["bn_gamma"] + raw["bn_beta"])
    x = jnp.maximum(x, 0.0)
    fen_out = x @ raw["fen_fc2_w"].T + raw["fen_fc2_b"]
    y = jnp.maximum(fen_out @ raw["c_fc1_w"].T + raw["c_fc1_b"], 0.0)
    return y @ raw["c_fc_w"].T + raw["c_fc_b"]        # (B, 1)


def folded_reference(B, kp):
    """Same math (folded BN, bf16 weights, packed slabs) as the kernel."""
    w, vec = kp["w"], kp["vec"]
    h1 = w.shape[0]
    h2 = w.shape[1] - h1
    wdt = w.dtype
    h = jnp.maximum(vec[0:1, :h1], 0.0)
    x = jnp.dot(h.astype(wdt), w[:, :h1],
                preferred_element_type=jnp.float32) + vec[1:2, :h1]
    x = jnp.dot(x.astype(wdt), w[:, h1:],
                preferred_element_type=jnp.float32) + vec[2:3, :h2]
    x = jnp.maximum(x, 0.0)
    y = jnp.sum(x * vec[3:4, :h2], axis=-1, keepdims=True) + vec[4:5, 0:1]
    return jnp.broadcast_to(y, (B, 1))


if __name__ == "__main__":
    key = jax.random.PRNGKey(0)
    k_img, k_par = jax.random.split(key)

    B, H1, H2 = 4, 256, 128
    # Image kept for signature fidelity (288x288 is what the fragment slicing
    # expects); its values never influence the output.
    image = jax.random.normal(k_img, (B, 3, 288, 288), jnp.float32)

    raw = init_raw_params(k_par, H1, H2)
    kparams = fold_params(raw)

    out = jax.block_until_ready(critic_model_forward(image, kparams))
    assert out.shape == (B, 1), out.shape

    # (1) Kernel vs identical-math JAX reference (tight tolerance).
    same = folded_reference(B, kparams)
    assert jnp.allclose(out, same, atol=1e-4, rtol=1e-4), \
        "mismatch vs folded reference"

    # (2) Kernel vs original-module f32 semantics (bf16-weight tolerance).
    ref = reference_forward(image, raw)
    assert jnp.allclose(out, ref, atol=5e-3, rtol=5e-3), \
        "mismatch vs original f32 semantics"

    print("KERNEL_OK")
</pallas_src>

<mosaic_0001>
module attributes {stable_mosaic.version = 11 : i64} {
  func.func @critic_head_kernel(%arg0: memref<5x256xf32, #tpu.memory_space<vmem>>, %arg1: memref<256x384xbf16, #tpu.memory_space<vmem>>, %arg2: memref<1x1xf32, #tpu.memory_space<vmem>>) attributes {dimension_semantics = [], scalar_prefetch = 0 : i64, scratch_operands = 0 : i64, tpu.core_type = #tpu.core_type<tc>} {
    %c0 = arith.constant 0 : index
    %c0_0 = arith.constant 0 : index
    %0 = vector.load %arg0[%c0, %c0_0] : memref<5x256xf32, #tpu.memory_space<vmem>>, vector<1x256xf32>
    %cst = arith.constant 0.000000e+00 : f32
    %1 = vector.broadcast %cst : f32 to vector<1x256xf32>
    %2 = arith.maximumf %0, %1 : vector<1x256xf32>
    %3 = arith.truncf %2 : vector<1x256xf32> to vector<1x256xbf16>
    %c0_1 = arith.constant 0 : index
    %c0_2 = arith.constant 0 : index
    %4 = vector.load %arg1[%c0_1, %c0_2] : memref<256x384xbf16, #tpu.memory_space<vmem>>, vector<256x256xbf16>
    %cst_3 = arith.constant dense<0.000000e+00> : vector<1x256xf32>
    %5 = tpu.matmul %3, %4, %cst_3 {dimension_numbers = #tpu.dot_dimension_numbers<[1], [0], [0], [1], [0, 0, 1, 1], [], []>} : vector<1x256xbf16>, vector<256x256xbf16>, vector<1x256xf32> -> vector<1x256xf32>
    %c1 = arith.constant 1 : index
    %c0_4 = arith.constant 0 : index
    %6 = vector.load %arg0[%c1, %c0_4] : memref<5x256xf32, #tpu.memory_space<vmem>>, vector<1x256xf32>
    %7 = arith.addf %5, %6 : vector<1x256xf32>
    %8 = arith.truncf %7 : vector<1x256xf32> to vector<1x256xbf16>
    %c0_5 = arith.constant 0 : index
    %c256 = arith.constant 256 : index
    %9 = vector.load %arg1[%c0_5, %c256] : memref<256x384xbf16, #tpu.memory_space<vmem>>, vector<256x128xbf16>
    %cst_6 = arith.constant dense<0.000000e+00> : vector<1x128xf32>
    %10 = tpu.matmul %8, %9, %cst_6 {dimension_numbers = #tpu.dot_dimension_numbers<[1], [0], [0], [1], [0, 0, 1, 1], [], []>} : vector<1x256xbf16>, vector<256x128xbf16>, vector<1x128xf32> -> vector<1x128xf32>
    %c2 = arith.constant 2 : index
    %c0_7 = arith.constant 0 : index
    %11 = vector.load %arg0[%c2, %c0_7] : memref<5x256xf32, #tpu.memory_space<vmem>>, vector<1x128xf32>
    %12 = arith.addf %10, %11 : vector<1x128xf32>
    %cst_8 = arith.constant 0.000000e+00 : f32
    %13 = vector.broadcast %cst_8 : f32 to vector<1x128xf32>
    %14 = arith.maximumf %12, %13 : vector<1x128xf32>
    %c3 = arith.constant 3 : index
    %c0_9 = arith.constant 0 : index
    %15 = vector.load %arg0[%c3, %c0_9] : memref<5x256xf32, #tpu.memory_space<vmem>>, vector<1x128xf32>
    %16 = arith.mulf %14, %15 : vector<1x128xf32>
    %cst_10 = arith.constant dense<0.000000e+00> : vector<1xf32>
    %17 = vector.multi_reduction <add>, %16, %cst_10 [1] : vector<1x128xf32> to vector<1xf32>
    %18 = vector.shape_cast %17 : vector<1xf32> to vector<1x1xf32>
    %c4 = arith.constant 4 : index
    %c0_11 = arith.constant 0 : index
    %19 = vector.load %arg0[%c4, %c0_11] : memref<5x256xf32, #tpu.memory_space<vmem>>, vector<1x1xf32>
    %20 = arith.addf %18, %19 : vector<1x1xf32>
    %c0_12 = arith.constant 0 : index
    %c0_13 = arith.constant 0 : index
    %21 = vector.load %arg2[%c0_12, %c0_13] : memref<1x1xf32, #tpu.memory_space<vmem>>, vector<1x1xf32>
    tpu.vector_store %arg2[%c0_12, %c0_13], %20 {strides = array<i32>} : memref<1x1xf32, #tpu.memory_space<vmem>>, vector<1x1xf32>,
    return
  }
}

</mosaic_0001>

<bundles_post_ra>
// kernel: tpu_custom_call.1
= control target key start
LH: loop header
LB: loop body
LE: loop exit
PB: predicated region body
PF: predicated region fallthrough
CT: control target
= control target key end

     0   :  { %7 = vsyncpa [#allocation3], 0  ;;  %s747_s0 = inlined_call_operand.hbm [shape: f32[5,256], index: 0, kind: input, shape index: {}]   ;;  %s748_s1 = inlined_call_operand.hbm [shape: bf16[256,384], index: 1, kind: input, shape index: {}]   ;;  %s749_s2 = inlined_call_operand.hbm [shape: f32[1,1], index: 2, kind: output, shape index: {}]  }
   0x1   :  { %8 = vsyncpa [#allocation6], 0 }
   0x2   :  { %9 = vsyncpa [#allocation4], 0  ;;  %s703_s9 = smov [#allocation2]   ;;  %s704_s11 = smov [#allocation5]  }
   0x3   :  { %s16_s10 = sshll.u32 %s703_s9, 4  ;;  %s25_s12 = sshll.u32 %s704_s11, 4  ;;  %s17_s10 = int_to_ptr.vmem [resolvable:$true] %s16_s10  ;;  %s26_s12 = int_to_ptr.vmem [resolvable:$true] %s25_s12 }
   0x4   :  { %s645_s13 = scalar_lea.vmem %s17_s10, 256  ;;  %p650_p1 = scmp.lt.s32.totalorder %s17_s10, %s17_s10 }
   0x5   :  { %p646_p0 = scmp.ne.s32.totalorder %s17_s10, %s645_s13  ;;  %p651_p2 = scmp.lt.s32.totalorder %s645_s13, %s645_s13 }
   0x7   :  { %p652_p3 = por %p651_p2, %p650_p1 }
   0x9   :  { %p653_p4 = pnand %p652_p3, %p646_p0 }
   0xb   :  { %656 = shalt.err (!%p653_p4)
}
   0xc   :  { %19 = dma.hbm_to_vmem [thread:$0]  %s747_s0, 256, %s17_s10, [#allocation3]  }
   0xd   :  { %s665_s16 = scalar_lea.vmem %s26_s12, 6144  ;;  %p670_p6 = scmp.lt.s32.totalorder %s26_s12, %s26_s12 }
   0xe   :  { %p666_p5 = scmp.ne.s32.totalorder %s26_s12, %s665_s16  ;;  %p671_p7 = scmp.lt.s32.totalorder %s665_s16, %s665_s16 }
  0x10   :  { %p672_p8 = por %p671_p7, %p670_p6 }
  0x12   :  { %p673_p9 = pnand %p672_p8, %p666_p5 }
  0x14   :  { %676 = shalt.err (!%p673_p9)
}
  0x15   :  { %s705_s17 = smov 192   ;;  %s706_s18 = smov 12  }
  0x16   :  { %31 = dma.hbm_to_vmem [thread:$0]  %s748_s1, 6144, %s26_s12, [#allocation6], %s705_s17, %s705_s17, %s706_s18  }
  0x17   :  { %697 = dma.done.wait [#allocation3], 256  }
  0x18   :  { %698 = vsyncadd [#allocation3], 4294967040 }
  0x19   :  { %699 = dma.done.wait [#allocation6], 6144  }
  0x1a   :  { %700 = vsyncadd [#allocation6], 4294961152  ;;  %v573_v0 = vld [vmem:[#allocation5 + $0xac] ss:$12 sps:$4 sm:$0xff]   ;;  %v575_v1 = vld [vmem:[#allocation5 + $0xa8] ss:$12 sps:$4 sm:$0xff]   ;;  %v42_v9 = vlaneseq }
  0x1b   :  { %259 = vmatprep.subr.bf16.mxu0 %v573_v0  ;;  %v576_v2 = vld [vmem:[#allocation5 + $0x94] ss:$12 sps:$4 sm:$0xff]   ;;  %v578_v3 = vld [vmem:[#allocation5 + $0x90] ss:$12 sps:$4 sm:$0xff]   ;;  %v581_v5 = vld [vmem:[#allocation5 + $0x78] ss:$12 sps:$4 sm:$0xff]  }
  0x1c   :  { %260 = vmatpush1.bf16.msra.mxu0 %v575_v1  ;;  %v579_v4 = vld [vmem:[#allocation5 + $0x7c] ss:$12 sps:$4 sm:$0xff]   ;;  %v582_v6 = vld [vmem:[#allocation5 + $0x64] ss:$12 sps:$4 sm:$0xff]   ;;  %v584_v7 = vld [vmem:[#allocation5 + $0x60] ss:$12 sps:$4 sm:$0xff]  }
  0x1d   :  { %261 = vmatprep.subr.bf16.mxu0 %v576_v2  ;;  %v585_v8 = vld [vmem:[#allocation5 + $0x4c] ss:$12 sps:$4 sm:$0xff]   ;;  %v587_v10 = vld [vmem:[#allocation5 + $0x48] ss:$12 sps:$4 sm:$0xff]   ;;  %v729_v12 = vshrl.u32 %v42_v9, 7  ;;  %vm474_vm0 = vcmask 1040384  }
  0x1e   :  { %v588_v11 = vld [vmem:[#allocation5 + $0x34] ss:$12 sps:$4 sm:$0xff]   ;;  %v590_v13 = vld [vmem:[#allocation5 + $0x30] ss:$12 sps:$4 sm:$0xff]   ;;  %v593_v16 = vld [vmem:[#allocation5 + $0x18] ss:$12 sps:$4 sm:$0xff]  }
  0x1f   :  { %v591_v14 = vld [vmem:[#allocation5 + $0x1c] ss:$12 sps:$4 sm:$0xff]   ;;  %v48_v15 = vsub.s32 1, %v729_v12  ;;  %v732_v17 = vld [vmem:[#allocation2] ss:$8 sm:$0x3] }
  0x20   :  { %262 = vmatpush1.bf16.msra.mxu0 %v578_v3  ;;  %v594_v18 = vld [vmem:[#allocation5 + $0x4] ss:$12 sps:$4 sm:$0xff]   ;;  %v40_v19 = vmax.f32 %v732_v17, 0.0  ;;  %v596_v23 = vld [vmem:[#allocation5] ss:$12 sps:$4 sm:$0xff]   ;;  %v44_v48 = vsub.s32 0, %v729_v12 }
  0x21   :  { %263 = vmatprep.subr.bf16.mxu0 %v579_v4  ;;  %v621_v20 = vld [vmem:[#allocation5 + $0x170] ss:$12 sps:$4 sm:$0xff]   ;;  %v623_v24 = vld [vmem:[#allocation5 + $0x158] ss:$12 sps:$4 sm:$0xff]   ;;  %v625_v27 = vld [vmem:[#allocation5 + $0x140] ss:$12 sps:$4 sm:$0xff]  }
  0x22   :  { %v49_v21 = vrot.slane %v40_v19, %v48_v15  ;;  %v622_v22 = vld [vmem:[#allocation5 + $0xb0] ss:$12 sps:$4 sm:$0xff]   ;;  %546 = vmatprep.subr.bf16.mxu1 %v621_v20  ;;  %v624_v26 = vld [vmem:[#allocation5 + $0x98] ss:$12 sps:$4 sm:$0xff]   ;;  %v599_v29 = vld [vmem:[#allocation5 + $0x168] ss:$12 sps:$4 sm:$0xff]   ;;  %v45_v51 = vrot.slane %v40_v19, %v44_v48 }
  0x23   :  { %547 = vmatpush3.bf16.msra.mxu1 %v622_v22  ;;  %v597_v28 = vld [vmem:[#allocation5 + $0x16c] ss:$12 sps:$4 sm:$0xff]   ;;  %v627_v31 = vld [vmem:[#allocation5 + $0x128] ss:$12 sps:$4 sm:$0xff]   ;;  %v602_v33 = vld [vmem:[#allocation5 + $0x150] ss:$12 sps:$4 sm:$0xff]  }
  0x24   :  { %264 = vmatpush1.bf16.msra.mxu0 %v581_v5  ;;  %v53_v25 = vpack.c.bf16 %v49_v21, %v49_v21  ;;  %548 = vmatprep.subr.bf16.mxu1 %v623_v24  ;;  %v626_v30 = vld [vmem:[#allocation5 + $0x80] ss:$12 sps:$4 sm:$0xff]   ;;  %v603_v34 = vld [vmem:[#allocation5 + $0x13c] ss:$12 sps:$4 sm:$0xff]   ;;  %v605_v38 = vld [vmem:[#allocation5 + $0x138] ss:$12 sps:$4 sm:$0xff]   ;;  %v52_v53 = vpack.c.bf16 %v45_v51, %v45_v51 }
  0x25   :  { %265 = vmatprep.subr.bf16.mxu0 %v582_v6  ;;  %v600_v32 = vld [vmem:[#allocation5 + $0x154] ss:$12 sps:$4 sm:$0xff]   ;;  %v629_v36 = vld [vmem:[#allocation5 + $0x110] ss:$12 sps:$4 sm:$0xff]   ;;  %v631_v39 = vld [vmem:[#allocation5 + $0xf8] ss:$12 sps:$4 sm:$0xff]  }
  0x26   :  { %291 = vmatprep.mubr.bf16.mxu0 %v53_v25  ;;  %v628_v35 = vld [vmem:[#allocation5 + $0x68] ss:$12 sps:$4 sm:$0xff]   ;;  %v630_v37 = vld [vmem:[#allocation5 + $0x50] ss:$12 sps:$4 sm:$0xff]   ;;  %v632_v41 = vld [vmem:[#allocation5 + $0x38] ss:$12 sps:$4 sm:$0xff]  }
  0x27   :  { %549 = vmatpush3.bf16.msra.mxu1 %v624_v26  ;;  %v606_v40 = vld [vmem:[#allocation5 + $0x124] ss:$12 sps:$4 sm:$0xff]   ;;  %v608_v42 = vld [vmem:[#allocation5 + $0x120] ss:$12 sps:$4 sm:$0xff]   ;;  %v611_v44 = vld [vmem:[#allocation5 + $0x108] ss:$12 sps:$4 sm:$0xff]  }
  0x28   :  { %266 = vmatpush1.bf16.msra.mxu0 %v584_v7  ;;  %550 = vmatprep.subr.bf16.mxu1 %v625_v27  ;;  %v609_v43 = vld [vmem:[#allocation5 + $0x10c] ss:$12 sps:$4 sm:$0xff]   ;;  %v612_v45 = vld [vmem:[#allocation5 + $0xf4] ss:$12 sps:$4 sm:$0xff]   ;;  %v614_v46 = vld [vmem:[#allocation5 + $0xf0] ss:$12 sps:$4 sm:$0xff]  }
  0x29   :  { %267 = vmatprep.subr.bf16.mxu0 %v585_v8  ;;  %v615_v47 = vld [vmem:[#allocation5 + $0xdc] ss:$12 sps:$4 sm:$0xff]   ;;  %v617_v49 = vld [vmem:[#allocation5 + $0xd8] ss:$12 sps:$4 sm:$0xff]   ;;  %v620_v52 = vld [vmem:[#allocation5 + $0xc0] ss:$12 sps:$4 sm:$0xff]  }
  0x2a   :  { %v618_v50 = vld [vmem:[#allocation5 + $0xc4] ss:$12 sps:$4 sm:$0xff]   ;;  %v633_v54 = vld [vmem:[#allocation5 + $0xe0] ss:$12 sps:$4 sm:$0xff]   ;;  %v635_v56 = vld [vmem:[#allocation5 + $0xc8] ss:$12 sps:$4 sm:$0xff]  }
  0x2b   :  { %551 = vmatpush3.bf16.msra.mxu1 %v626_v30  ;;  %v634_v55 = vld [vmem:[#allocation5 + $0x20] ss:$12 sps:$4 sm:$0xff]   ;;  %v636_v57 = vld [vmem:[#allocation5 + $0x8] ss:$12 sps:$4 sm:$0xff]   ;;  %v334_v6 = vld [vmem:[#allocation2 + $0x2] ss:$0 sm:$0xff] }
  0x2c   :  { %268 = vmatpush1.bf16.msra.mxu0 %v587_v10  ;;  %552 = vmatprep.subr.bf16.mxu1 %v627_v31  ;;  %v87_v58 = vld [vmem:[#allocation2 + $0x1] ss:$8 sm:$0x3]  ;;  %s707_s0 = smov [#allocation7]   ;;  %vm480_vm1 = vcmask 0  }
  0x2d   :  { %269 = vmatprep.subr.bf16.mxu0 %v588_v11  ;;  %v252_v59 = vrot.slane %v87_v58, %v44_v48  ;;  %v256_v60 = vrot.slane %v87_v58, %v48_v15  ;;  %s488_s1 = sshll.u32 %s707_s0, 4  ;;  %s489_s1 = int_to_ptr.vmem [resolvable:$true] %s488_s1 }
  0x2e   :  { %s677_s21 = scalar_lea.vmem %s489_s1, 16  ;;  %s681_s22 = scalar_lea.vmem %s489_s1, 32 }
  0x2f   :  { %553 = vmatpush3.bf16.msra.mxu1 %v628_v35  ;;  %p678_p10 = scmp.ne.s32.totalorder %s489_s1, %s677_s21  ;;  %p682_p11 = scmp.lt.s32.totalorder %s489_s1, %s489_s1 }
  0x30   :  { %270 = vmatpush1.bf16.msra.mxu0 %v590_v13  ;;  %554 = vmatprep.subr.bf16.mxu1 %v629_v36  ;;  %v472_v13 = vld [vmem:[#allocation2 + $0x3] ss:$0 sm:$0xff]  ;;  %p683_p12 = scmp.lt.s32.totalorder %s681_s22, %s677_s21 }
  0x31   :  { %271 = vmatprep.subr.bf16.mxu0 %v591_v14 }
  0x32   :  { %p684_p13 = por %p683_p12, %p682_p11 }
  0x33   :  { %555 = vmatpush3.bf16.msra.mxu1 %v630_v37 }
  0x34   :  { %272 = vmatpush1.bf16.msra.mxu0 %v593_v16  ;;  %556 = vmatprep.subr.bf16.mxu1 %v631_v39  ;;  %v478_v16 = vld [vmem:[#allocation2 + $0x4] ss:$0 sm:$0xff]  ;;  %p685_p0 = pnand %p684_p13, %p678_p10 }
  0x35   :  { %273 = vmatprep.subr.bf16.mxu0 %v594_v18 }
  0x37   :  { %557 = vmatpush3.bf16.msra.mxu1 %v632_v41 }
  0x38   :  { %274 = vmatpush1.bf16.msra.mxu0 %v596_v23  ;;  %558 = vmatprep.subr.bf16.mxu1 %v633_v54 }
  0x39   :  { %275 = vmatprep.subr.bf16.mxu0 %v597_v28 }
  0x3b   :  { %559 = vmatpush3.bf16.msra.mxu1 %v634_v55 }
  0x3c   :  { %276 = vmatpush2.bf16.msra.mxu0 %v599_v29  ;;  %560 = vmatprep.subr.bf16.mxu1 %v635_v56 }
  0x3d   :  { %277 = vmatprep.subr.bf16.mxu0 %v600_v32 }
  0x3f   :  { %561 = vmatpush3.bf16.msra.mxu1 %v636_v57 }
  0x40   :  { %278 = vmatpush2.bf16.msra.mxu0 %v602_v33 }
  0x41   :  { %279 = vmatprep.subr.bf16.mxu0 %v603_v34 }
  0x44   :  { %280 = vmatpush2.bf16.msra.mxu0 %v605_v38 }
  0x45   :  { %281 = vmatprep.subr.bf16.mxu0 %v606_v40 }
  0x48   :  { %282 = vmatpush2.bf16.msra.mxu0 %v608_v42 }
  0x49   :  { %283 = vmatprep.subr.bf16.mxu0 %v609_v43 }
  0x4c   :  { %284 = vmatpush2.bf16.msra.mxu0 %v611_v44 }
  0x4d   :  { %285 = vmatprep.subr.bf16.mxu0 %v612_v45 }
  0x50   :  { %286 = vmatpush2.bf16.msra.mxu0 %v614_v46 }
  0x51   :  { %287 = vmatprep.subr.bf16.mxu0 %v615_v47 }
  0x54   :  { %288 = vmatpush2.bf16.msra.mxu0 %v617_v49 }
  0x55   :  { %289 = vmatprep.subr.bf16.mxu0 %v618_v50 }
  0x58   :  { %290 = vmatpush2.bf16.msra.mxu0 %v620_v52 }
  0x5b   :  { %292 = vmatmul.mubr.bf16.vlgmr.msra.gmra.mxu0 %v52_v53 }
 0x11b   :  { %v293_v61 = vpop.f32.mrf.mxu0 }
 0x11c   :  { %v294_v62 = vadd.f32 %v293_v61, %v252_v59 }
 0x11d   :  { %v295_v63 = vpop.f32.mrf.mxu0 }
 0x11e   :  { %v296_v0 = vadd.f32 %v295_v63, %v256_v60  ;;  %v300_v3 = vpack.c.bf16 %v294_v62, %v294_v62 }
 0x11f   :  { %v297_v1 = vpop.f32.mrf.mxu0 }
 0x120   :  { %v301_v2 = vpack.c.bf16 %v296_v0, %v296_v0 }
 0x121   :  { %v298_v4 = vpop.f32.mrf.mxu0 }
 0x122   :  { %463 = vmatprep.mubr.bf16.mxu1 %v301_v2 }
 0x123   :  { %464 = vmatmul.mubr.bf16.vlgmr.msra.gmra.mxu1 %v300_v3 }
 0x1e3   :  { %v562_v5 = vpop.f32.mrf.mxu1 }
 0x1e5   :  { %v563_v7 = vpop.f32.mrf.mxu1 }
 0x1e6   :  { %v564_v8 = vadd.f32 %v563_v7, %v562_v5 }
 0x1e7   :  { %v565_v9 = vpop.f32.mrf.mxu1 }
 0x1e8   :  { %v466_v10 = vadd.f32 %v564_v8, %v334_v6 }
 0x1e9   :  { %v566_v11 = vpop.f32.mrf.mxu1 }
 0x1ea   :  { %v471_v12 = vmax.f32 %v466_v10, 0.0 }
 0x1ec   :  { %v473_v14 = vmul.f32 %v472_v13, %v471_v12 }
 0x1ee   :  { %v475_v15 = vsel %vm474_vm0, %v473_v14, 0.0 }
 0x1ef   :  { %476 = vadd.xlane.f32.xlu0 %v475_v15 }
 0x278   :  { %v477_v17 = vpop.xlane.xlu0 %476 }
 0x279   :  { %v479_v18 = vadd.f32 %v478_v16, %v477_v17 }
 0x27b   :  { %481 = vst.msk [vmem:[#allocation7] sm:$0x1] %vm480_vm1, %v479_v18 }
 0x27c   :  { %688 = shalt.err (!%p685_p0)
}
 0x27d   :  { %491 = dma.vmem_to_hbm [thread:$0]  %s489_s1, 16, %s749_s2, [#allocation4]  }
 0x27e   :  { %701 = dma.done.wait [#allocation4], 16  }
 0x27f   :  { %702 = vsyncadd [#allocation4], 4294967280 }
 0x280   :  { %495 = vsyncpa [#allocation3], 1 }
 0x281   :  { %496 = vsyncpa [#allocation6], 1 }
 0x282   :  { %497 = vsyncpa [#allocation4], 1 }

</bundles_post_ra>
